<compile_context>
chip_gen: v6e
topology: v6e:2x2x1
jax: 0.10.0
libtpu: 0.0.40
codegen_flags: <defaults>
</compile_context>

<pallas_src>
import jax
import jax.numpy as jnp
from jax.experimental import pallas as pl
from jax.experimental.pallas import tpu as pltpu


def _round_up(x, m):
    return (x + m - 1) // m * m


def _residual_vpu_kernel(x_ref, wt_ref, b_ref, o_ref):
    """Small-C path: unrolled VPU MAC over channels, no MXU.

    x_ref: (nb, C, tp)   activation tile (lane axis = pixels)
    wt_ref: (C, C)       transposed weight, wt[c_out, c_in] = w[c_in, c_out]
    b_ref: (C, 1)        bias column (broadcast along lanes)
    """
    x = x_ref[...].astype(jnp.float32)            # (nb, C, tp)
    wt = wt_ref[...].astype(jnp.float32)          # (C, C)
    C = wt.shape[0]
    acc = x + b_ref[...].astype(jnp.float32)      # residual + bias
    for k in range(C):                            # static unroll, C is tiny
        # (C,1) lane-broadcast  *  (nb,1,tp) sublane-broadcast  -> (nb,C,tp)
        acc = acc + wt[:, k:k + 1] * x[:, k:k + 1, :]
    o_ref[...] = acc.astype(o_ref.dtype)


def _residual_mxu_kernel(x_ref, wt_ref, b_ref, o_ref):
    """Large-C path: MXU matmul with fused bias + residual, f32 accumulate."""
    wt = wt_ref[...]
    bias = b_ref[...].astype(jnp.float32)         # (C, 1)
    nb = x_ref.shape[0]
    for n in range(nb):                           # static, nb is tiny
        x = x_ref[n]                              # (C, tp)
        y = jnp.dot(wt, x, preferred_element_type=jnp.float32)
        o_ref[n] = (y + bias + x.astype(jnp.float32)).astype(o_ref.dtype)


def residual_pointwise(x_nchw, w, b, *, target_tile_bytes=1 << 20):
    """Residual(fn)(x) with fn = per-pixel linear over channels (1x1 conv).

    x_nchw: (B, C, H, W)
    w:      (C, C)  maps input channels -> output channels (x_vec @ w)
    b:      (C,)
    """
    B, C, H, W = x_nchw.shape
    P = H * W

    # (B, C, H, W) -> (B, C, P): contiguous merge, no HBM data movement.
    x3 = x_nchw.reshape(B, C, P)
    itemsize = jnp.dtype(x3.dtype).itemsize

    # ---- tile sizing by bytes: ~target_tile_bytes of activation per step ----
    lanes = max(1, target_tile_bytes // max(1, C * itemsize))
    tp = max(128, (lanes // 128) * 128)           # lane-dense, multiple of 128
    tp = min(tp, _round_up(P, 128))               # never bigger than needed
    p_tiles = pl.cdiv(P, tp)

    # If one pixel tile covers all pixels and is still small, block several
    # batch rows per grid step (strided DMA handles the batch axis).
    nb = 1
    if p_tiles == 1:
        per_batch = C * tp * itemsize
        nb = int(max(1, min(B, target_tile_bytes // max(1, per_batch))))
    b_tiles = pl.cdiv(B, nb)

    # ---- grid: busier axis first so the v7x megacore split lands on it ----
    if p_tiles >= b_tiles:
        grid = (p_tiles, b_tiles)
        x_map = lambda pi, bi: (bi, 0, pi)
    else:
        grid = (b_tiles, p_tiles)
        x_map = lambda bi, pi: (bi, 0, pi)

    wt = jnp.transpose(w)                         # (c_out, c_in); tiny
    b2 = b.reshape(C, 1).astype(jnp.float32)

    kernel = _residual_vpu_kernel if C <= 8 else _residual_mxu_kernel

    # ---- explicit VMEM budget: 2x double-buffered x + 2x out + W + bias ----
    tile_bytes = nb * C * tp * itemsize
    vmem_bytes = 4 * tile_bytes + C * C * itemsize + C * 4 + (2 << 20)
    vmem_bytes = int(min(max(vmem_bytes, 4 << 20), 64 << 20))

    out3 = pl.pallas_call(
        kernel,
        out_shape=jax.ShapeDtypeStruct((B, C, P), x3.dtype),
        grid_spec=pltpu.PrefetchScalarGridSpec(
            num_scalar_prefetch=0,
            grid=grid,
            in_specs=[
                pl.BlockSpec((nb, C, tp), x_map),           # activation tile
                pl.BlockSpec((C, C), lambda *_: (0, 0)),    # resident weight
                pl.BlockSpec((C, 1), lambda *_: (0, 0)),    # resident bias
            ],
            out_specs=pl.BlockSpec((nb, C, tp), x_map),
        ),
        compiler_params=pltpu.CompilerParams(
            dimension_semantics=("parallel", "parallel"),
            vmem_limit_bytes=vmem_bytes,
        ),
        cost_estimate=pl.CostEstimate(
            flops=2 * B * P * C * C,
            transcendentals=0,
            bytes_accessed=(2 * B * C * P + C * C + C) * itemsize,
        ),
    )(x3, wt, b2)

    return out3.reshape(B, C, H, W)


if __name__ == "__main__":
    key = jax.random.PRNGKey(0)
    kx, kw, kb = jax.random.split(key, 3)

    B, C, H, W = 2, 4, 16, 16                     # small NCHW input
    x = jax.random.normal(kx, (B, C, H, W), dtype=jnp.float32)
    w = jax.random.normal(kw, (C, C), dtype=jnp.float32) * 0.1
    b = jax.random.normal(kb, (C,), dtype=jnp.float32) * 0.1

    out = jax.block_until_ready(residual_pointwise(x, w, b))

    # pure-JAX reference: fn(x) + x, fn = 1x1 conv (per-pixel linear)
    ref = jnp.einsum("bihw,io->bohw", x, w) + b[None, :, None, None] + x
    assert jnp.allclose(out, ref, atol=1e-5, rtol=1e-5), "mismatch vs reference"

    print("KERNEL_OK")
</pallas_src>

<mosaic_0001>
module attributes {stable_mosaic.version = 11 : i64} {
  func.func @_residual_vpu_kernel(%arg0: i32, %arg1: i32, %arg2: memref<2x4x256xf32, #tpu.memory_space<vmem>>, %arg3: memref<4x4xf32, #tpu.memory_space<vmem>>, %arg4: memref<4x1xf32, #tpu.memory_space<vmem>>, %arg5: memref<2x4x256xf32, #tpu.memory_space<vmem>>) attributes {dimension_semantics = [#tpu.dimension_semantics<parallel>, #tpu.dimension_semantics<parallel>], iteration_bounds = array<i64: 1, 1>, scalar_prefetch = 0 : i64, scratch_operands = 0 : i64, tpu.core_type = #tpu.core_type<tc>, window_params = [{transform_indices = @transform_0, window_bounds = array<i64: 2, 4, 256>}, {pipeline_mode = #tpu.pipeline_mode<synchronous>, transform_indices = @transform_1, window_bounds = array<i64: 4, 4>}, {pipeline_mode = #tpu.pipeline_mode<synchronous>, transform_indices = @transform_2, window_bounds = array<i64: 4, 1>}, {transform_indices = @transform_3, window_bounds = array<i64: 2, 4, 256>}]} {
    %c0 = arith.constant 0 : index
    %c0_0 = arith.constant 0 : index
    %c0_1 = arith.constant 0 : index
    %0 = vector.load %arg2[%c0, %c0_0, %c0_1] : memref<2x4x256xf32, #tpu.memory_space<vmem>>, vector<2x4x256xf32>
    %c0_2 = arith.constant 0 : index
    %c0_3 = arith.constant 0 : index
    %1 = vector.load %arg3[%c0_2, %c0_3] : memref<4x4xf32, #tpu.memory_space<vmem>>, vector<4x4xf32>
    %c0_4 = arith.constant 0 : index
    %c0_5 = arith.constant 0 : index
    %2 = vector.load %arg4[%c0_4, %c0_5] : memref<4x1xf32, #tpu.memory_space<vmem>>, vector<4x1xf32>
    %3 = vector.shape_cast %2 : vector<4x1xf32> to vector<1x4x1xf32>
    %4 = vector.broadcast %3 : vector<1x4x1xf32> to vector<2x4x256xf32>
    %5 = arith.addf %0, %4 : vector<2x4x256xf32>
    %6 = vector.extract_strided_slice %1 {offsets = [0, 0], sizes = [4, 1], strides = [1, 1]} : vector<4x4xf32> to vector<4x1xf32>
    %7 = vector.extract_strided_slice %0 {offsets = [0, 0, 0], sizes = [2, 1, 256], strides = [1, 1, 1]} : vector<2x4x256xf32> to vector<2x1x256xf32>
    %8 = vector.shape_cast %6 : vector<4x1xf32> to vector<1x4x1xf32>
    %9 = vector.broadcast %8 : vector<1x4x1xf32> to vector<2x4x256xf32>
    %10 = vector.broadcast %7 : vector<2x1x256xf32> to vector<2x4x256xf32>
    %11 = arith.mulf %9, %10 : vector<2x4x256xf32>
    %12 = arith.addf %5, %11 : vector<2x4x256xf32>
    %13 = vector.extract_strided_slice %1 {offsets = [0, 1], sizes = [4, 1], strides = [1, 1]} : vector<4x4xf32> to vector<4x1xf32>
    %14 = vector.extract_strided_slice %0 {offsets = [0, 1, 0], sizes = [2, 1, 256], strides = [1, 1, 1]} : vector<2x4x256xf32> to vector<2x1x256xf32>
    %15 = vector.shape_cast %13 : vector<4x1xf32> to vector<1x4x1xf32>
    %16 = vector.broadcast %15 : vector<1x4x1xf32> to vector<2x4x256xf32>
    %17 = vector.broadcast %14 : vector<2x1x256xf32> to vector<2x4x256xf32>
    %18 = arith.mulf %16, %17 : vector<2x4x256xf32>
    %19 = arith.addf %12, %18 : vector<2x4x256xf32>
    %20 = vector.extract_strided_slice %1 {offsets = [0, 2], sizes = [4, 1], strides = [1, 1]} : vector<4x4xf32> to vector<4x1xf32>
    %21 = vector.extract_strided_slice %0 {offsets = [0, 2, 0], sizes = [2, 1, 256], strides = [1, 1, 1]} : vector<2x4x256xf32> to vector<2x1x256xf32>
    %22 = vector.shape_cast %20 : vector<4x1xf32> to vector<1x4x1xf32>
    %23 = vector.broadcast %22 : vector<1x4x1xf32> to vector<2x4x256xf32>
    %24 = vector.broadcast %21 : vector<2x1x256xf32> to vector<2x4x256xf32>
    %25 = arith.mulf %23, %24 : vector<2x4x256xf32>
    %26 = arith.addf %19, %25 : vector<2x4x256xf32>
    %27 = vector.extract_strided_slice %1 {offsets = [0, 3], sizes = [4, 1], strides = [1, 1]} : vector<4x4xf32> to vector<4x1xf32>
    %28 = vector.extract_strided_slice %0 {offsets = [0, 3, 0], sizes = [2, 1, 256], strides = [1, 1, 1]} : vector<2x4x256xf32> to vector<2x1x256xf32>
    %29 = vector.shape_cast %27 : vector<4x1xf32> to vector<1x4x1xf32>
    %30 = vector.broadcast %29 : vector<1x4x1xf32> to vector<2x4x256xf32>
    %31 = vector.broadcast %28 : vector<2x1x256xf32> to vector<2x4x256xf32>
    %32 = arith.mulf %30, %31 : vector<2x4x256xf32>
    %33 = arith.addf %26, %32 : vector<2x4x256xf32>
    %c0_6 = arith.constant 0 : index
    %c0_7 = arith.constant 0 : index
    %c0_8 = arith.constant 0 : index
    %34 = vector.load %arg5[%c0_6, %c0_7, %c0_8] : memref<2x4x256xf32, #tpu.memory_space<vmem>>, vector<2x4x256xf32>
    tpu.vector_store %arg5[%c0_6, %c0_7, %c0_8], %33 {strides = array<i32>} : memref<2x4x256xf32, #tpu.memory_space<vmem>>, vector<2x4x256xf32>,
    return
  }
  func.func @transform_0(%arg0: i32, %arg1: i32) -> (i32, i32, i32) {
    %c0_i32 = arith.constant 0 : i32
    %c0_i32_0 = arith.constant 0 : i32
    return %arg1, %c0_i32, %arg0 : i32, i32, i32
  }
  func.func @transform_1(%arg0: i32, %arg1: i32) -> (i32, i32) {
    %c0_i32 = arith.constant 0 : i32
    %c0_i32_0 = arith.constant 0 : i32
    %c0_i32_1 = arith.constant 0 : i32
    return %c0_i32, %c0_i32_0 : i32, i32
  }
  func.func @transform_2(%arg0: i32, %arg1: i32) -> (i32, i32) {
    %c0_i32 = arith.constant 0 : i32
    %c0_i32_0 = arith.constant 0 : i32
    %c0_i32_1 = arith.constant 0 : i32
    return %c0_i32, %c0_i32_0 : i32, i32
  }
  func.func @transform_3(%arg0: i32, %arg1: i32) -> (i32, i32, i32) {
    %c0_i32 = arith.constant 0 : i32
    %c0_i32_0 = arith.constant 0 : i32
    return %arg1, %c0_i32, %arg0 : i32, i32, i32
  }
}

</mosaic_0001>

<bundles_post_ra>
// kernel: tpu_custom_call.1
= control target key start
LH: loop header
LB: loop body
LE: loop exit
PB: predicated region body
PF: predicated region fallthrough
CT: control target
= control target key end

     0   :  { %8 = vsyncpa [#allocation3], 0  ;;  %s397_s0 = inlined_call_operand.hbm [shape: f32[2,4,256], index: 0, kind: input, shape index: {}]   ;;  %s398_s1 = inlined_call_operand.vmem [shape: f32[4,4], index: 1, kind: input, shape index: {}]   ;;  %s399_s2 = inlined_call_operand.vmem [shape: f32[4,1], index: 2, kind: input, shape index: {}]   ;;  %s400_s3 = inlined_call_operand.hbm [shape: f32[2,4,256], index: 3, kind: output, shape index: {}]  }
   0x1   :  { %9 = vsyncpa [#allocation4], 0  ;;  %s342_s12 = smov [#allocation2]  }
   0x2   :  { %s15_s13 = sshll.u32 %s342_s12, 4  ;;  %s16_s13 = int_to_ptr.vmem [resolvable:$true] %s15_s13 }
   0x3   :  { %s306_s14 = scalar_lea.vmem %s16_s13, 256  ;;  %p311_p1 = scmp.lt.s32.totalorder %s16_s13, %s16_s13 }
   0x4   :  { %p307_p0 = scmp.ne.s32.totalorder %s16_s13, %s306_s14  ;;  %p312_p2 = scmp.lt.s32.totalorder %s306_s14, %s306_s14 }
   0x6   :  { %p313_p3 = por %p312_p2, %p311_p1 }
   0x8   :  { %p314_p4 = pnand %p313_p3, %p307_p0 }
   0xa   :  { %317 = shalt.err (!%p314_p4)
}
   0xb   :  { %s343_s15 = smov 128   ;;  %s344_s16 = smov 8  }
   0xc   :  { %21 = dma.hbm_to_vmem [thread:$0]  %s397_s0, 256, %s16_s13, [#allocation3], %s343_s15, %s343_s15, %s344_s16  }
   0xd   :  { %338 = dma.done.wait [#allocation3], 256  }
   0xe   :  { %339 = vsyncadd [#allocation3], 4294967040  ;;  %v345_v0 = vmov 0   ;;  %v346_v1 = vmov 1   ;;  %v32_v2 = vld [vmem:[%s399_s2] sm:$0xf]  ;;  %v40_v6 = vlaneseq }
   0xf   :  { %294 = vset.pattern.permute.xlu0 %v345_v0  ;;  %295 = vset.pattern.permute.xlu1 %v346_v1  ;;  %v31_v3 = vld [vmem:[%s398_s1] sm:$0xf]  ;;  %v347_v4 = vmov 2   ;;  %v348_v5 = vmov 3   ;;  %v349_v7 = vmov 839922192  }
  0x10   :  { %35 = vperm.xlu0 %294, %v32_v2   ;;  %105 = vperm.xlu1 %295, %v31_v3   ;;  %v38_v8 = vunpack.c.l.s4 %v349_v7  ;;  %v41_v9 = vshrl.u32 %v40_v6, 7  ;;  %v29_v12 = vld [vmem:[#allocation2] sm:$0xff]  ;;  %v30_v15 = vld [vmem:[#allocation2 + $0x8] sm:$0xff]  ;;  %s350_s0 = smov [#allocation5]  }
  0x11   :  { %s273_s1 = sshll.u32 %s350_s0, 4  ;;  %s274_s1 = int_to_ptr.vmem [resolvable:$true] %s273_s1 }
  0x12   :  { %v39_v10 = vunpack.c.0.s8 %v38_v8  ;;  %v110_v11 = vsub.s32 1, %v41_v9  ;;  %v114_v13 = vsub.s32 5, %v41_v9  ;;  %v56_v14 = vsub.s32 0, %v41_v9  ;;  %s318_s2 = scalar_lea.vmem %s274_s1, 256  ;;  %p323_p6 = scmp.lt.s32.totalorder %s274_s1, %s274_s1 }
  0x13   :  { %v60_v16 = vsub.s32 4, %v41_v9  ;;  %v164_v17 = vsub.s32 2, %v41_v9  ;;  %v168_v18 = vsub.s32 6, %v41_v9  ;;  %v383_v19 = vsub.s32 3, %v41_v9  ;;  %p319_p5 = scmp.ne.s32.totalorder %s274_s1, %s318_s2  ;;  %p324_p7 = scmp.lt.s32.totalorder %s318_s2, %s318_s2 }
  0x14   :  { %49 = vperm.xlu0 %294, %v31_v3   ;;  %296 = vset.pattern.permute.xlu1 %v347_v4  ;;  %v42_v20 = vsub.s32 %v39_v10, %v41_v9  ;;  %v111_v21 = vrot.slane %v29_v12, %v110_v11  ;;  %v222_v22 = vsub.s32 7, %v41_v9  ;;  %v115_v23 = vrot.slane %v29_v12, %v114_v13 }
  0x15   :  { %159 = vperm.xlu1 %296, %v31_v3   ;;  %v119_v24 = vrot.slane %v30_v15, %v110_v11  ;;  %v123_v25 = vrot.slane %v30_v15, %v114_v13  ;;  %v57_v26 = vrot.slane %v29_v12, %v56_v14  ;;  %v61_v27 = vrot.slane %v29_v12, %v60_v16  ;;  %p325_p8 = por %p324_p7, %p323_p6 }
  0x16   :  { %v65_v28 = vrot.slane %v30_v15, %v56_v14  ;;  %v69_v29 = vrot.slane %v30_v15, %v60_v16  ;;  %v165_v30 = vrot.slane %v29_v12, %v164_v17  ;;  %v169_v31 = vrot.slane %v29_v12, %v168_v18 }
  0x17   :  { %v173_v32 = vrot.slane %v30_v15, %v164_v17  ;;  %v177_v33 = vrot.slane %v30_v15, %v168_v18  ;;  %v219_v34 = vrot.slane %v29_v12, %v383_v19  ;;  %v131_v35 = vrot.slane %v111_v21, %v110_v11  ;;  %p326_p9 = pnand %p325_p8, %p319_p5 }
  0x18   :  { %297 = vset.pattern.permute.xlu0 %v348_v5  ;;  %v223_v36 = vrot.slane %v29_v12, %v222_v22  ;;  %v227_v37 = vrot.slane %v30_v15, %v383_v19  ;;  %v231_v38 = vrot.slane %v30_v15, %v222_v22  ;;  %v135_v41 = vrot.slane %v115_v23, %v110_v11 }
  0x19   :  { %213 = vperm.xlu0 %297, %v31_v3   ;;  %v139_v42 = vrot.slane %v119_v24, %v110_v11  ;;  %v143_v43 = vrot.slane %v123_v25, %v110_v11  ;;  %v77_v44 = vrot.slane %v57_v26, %v56_v14  ;;  %v81_v45 = vrot.slane %v61_v27, %v56_v14 }
  0x1a   :  { %v85_v46 = vrot.slane %v65_v28, %v56_v14  ;;  %v89_v47 = vrot.slane %v69_v29, %v56_v14  ;;  %v185_v48 = vrot.slane %v165_v30, %v164_v17  ;;  %v189_v49 = vrot.slane %v169_v31, %v164_v17 }
  0x1b   :  { %v193_v50 = vrot.slane %v173_v32, %v164_v17  ;;  %v197_v51 = vrot.slane %v177_v33, %v164_v17  ;;  %v239_v52 = vrot.slane %v219_v34, %v383_v19  ;;  %v243_v54 = vrot.slane %v223_v36, %v383_v19 }
  0x1c   :  { %v247_v55 = vrot.slane %v227_v37, %v383_v19  ;;  %v251_v56 = vrot.slane %v231_v38, %v383_v19 }
  0x8b   :  { %v36_v39 = vpop.permute.xlu0 %35  ;;  %v106_v40 = vpop.permute.xlu1 %105 }
  0x8c   :  { %v43_v53 = vrot.slane %v36_v39, %v42_v20  ;;  %v144_v57 = vmul.f32 %v131_v35, %v106_v40  ;;  %v145_v58 = vmul.f32 %v135_v41, %v106_v40  ;;  %v146_v59 = vmul.f32 %v139_v42, %v106_v40 }
  0x8d   :  { %v147_v60 = vmul.f32 %v143_v43, %v106_v40 }
  0x8e   :  { %v45_v7 = vadd.f32 %v43_v53, %v29_v12  ;;  %v46_v8 = vadd.f32 %v43_v53, %v30_v15  ;;  %v152_v11 = vcombine.low %v144_v57, %v145_v58 }
  0x8f   :  { %v50_v61 = vpop.permute.xlu0 %49  ;;  %v153_v13 = vcombine.low %v146_v59, %v147_v60 }
  0x90   :  { %v90_v62 = vmul.f32 %v77_v44, %v50_v61  ;;  %v91_v63 = vmul.f32 %v81_v45, %v50_v61  ;;  %v92_v0 = vmul.f32 %v85_v46, %v50_v61  ;;  %v93_v1 = vmul.f32 %v89_v47, %v50_v61  ;;  %v160_v2 = vpop.permute.xlu1 %159 }
  0x91   :  { %v198_v3 = vmul.f32 %v185_v48, %v160_v2  ;;  %v199_v4 = vmul.f32 %v189_v49, %v160_v2  ;;  %v200_v5 = vmul.f32 %v193_v50, %v160_v2  ;;  %v201_v6 = vmul.f32 %v197_v51, %v160_v2 }
  0x92   :  { %v98_v9 = vcombine.low %v90_v62, %v91_v63  ;;  %v99_v10 = vcombine.low %v92_v0, %v93_v1 }
  0x93   :  { %v206_v17 = vcombine.low %v198_v3, %v199_v4  ;;  %v207_v18 = vcombine.low %v200_v5, %v201_v6 }
  0x94   :  { %v102_v14 = vadd.f32 %v98_v9, %v45_v7  ;;  %v103_v16 = vadd.f32 %v99_v10, %v46_v8  ;;  %v214_v19 = vpop.permute.xlu0 %213 }
  0x95   :  { %v252_v20 = vmul.f32 %v239_v52, %v214_v19  ;;  %v253_v21 = vmul.f32 %v243_v54, %v214_v19  ;;  %v254_v22 = vmul.f32 %v247_v55, %v214_v19  ;;  %v255_v23 = vmul.f32 %v251_v56, %v214_v19 }
  0x96   :  { %v156_v24 = vadd.f32 %v152_v11, %v102_v14  ;;  %v157_v25 = vadd.f32 %v153_v13, %v103_v16 }
  0x97   :  { %v260_v26 = vcombine.low %v252_v20, %v253_v21  ;;  %v261_v27 = vcombine.low %v254_v22, %v255_v23 }
  0x98   :  { %v210_v12 = vadd.f32 %v206_v17, %v156_v24  ;;  %v211_v15 = vadd.f32 %v207_v18, %v157_v25 }
  0x9a   :  { %v264_v28 = vadd.f32 %v260_v26, %v210_v12  ;;  %v265_v29 = vadd.f32 %v261_v27, %v211_v15 }
  0x9c   :  { %266 = vst [vmem:[#allocation5] sm:$0xff] %v264_v28  ;;  %267 = vst [vmem:[#allocation5 + $0x8] sm:$0xff] %v265_v29 }
  0x9d   :  { %329 = shalt.err (!%p326_p9)
}
  0x9e   :  { %279 = dma.vmem_to_hbm [thread:$0]  %s274_s1, 256, %s400_s3, [#allocation4], %s343_s15, %s343_s15, %s344_s16  }
  0x9f   :  { %340 = dma.done.wait [#allocation4], 256  }
  0xa0   :  { %341 = vsyncadd [#allocation4], 4294967040 }
  0xa1   :  { %283 = vsyncpa [#allocation3], 1 }
  0xa2   :  { %284 = vsyncpa [#allocation4], 1 }

</bundles_post_ra>
